<compile_context>
chip_gen: v6e
topology: v6e:2x2x1
jax: 0.10.0
libtpu: 0.0.40
codegen_flags: <defaults>
</compile_context>

<pallas_src>
import functools

import jax
import jax.numpy as jnp
from jax import lax
from jax.experimental import pallas as pl
from jax.experimental.pallas import tpu as pltpu

_LANE = 128


def _pg_loss_kernel(pred_ref, target_ref, reward_ref, out_ref, *, ignore_index):
    # pred_ref:   (TILE_B, TILE_V) in the caller's dtype (f32 / bf16 / ...)
    # target_ref: (TILE_B, 1) int32
    # reward_ref: (TILE_B, 1) float32
    # out_ref:    (TILE_B, 1) float32, resident across the vocab grid axis.
    vi = pl.program_id(1)

    @pl.when(vi == 0)
    def _init():
        out_ref[...] = jnp.zeros_like(out_ref)

    pred = pred_ref[...]                      # (TILE_B, TILE_V), input dtype
    tgt = target_ref[...]                     # (TILE_B, 1) int32
    tb, tv = pred.shape

    # Shift the (TILE_B,1) target instead of the full-tile iota: the iota is
    # grid-invariant (hoistable) and the full-tile int32 add per step is gone.
    tgt_local = tgt - vi * tv                 # (TILE_B, 1)
    lane = lax.broadcasted_iota(jnp.int32, (tb, tv), 1)
    one_hot = lane == tgt_local               # (TILE_B, TILE_V) bool
    # Partial-block safety: padded vocab lanes have lane index >= V - vi*tv
    # while any valid in-tile target has tgt_local < V - vi*tv, so pad lanes
    # never match; padded batch rows are never written back by Pallas.

    # Select + lane (XLU) reduce in the *input* dtype (bit-exact: at most one
    # non-zero per row per tile), cast only the (TILE_B,1) result to f32.
    hit = jnp.sum(jnp.where(one_hot, pred, jnp.zeros_like(pred)),
                  axis=1, keepdims=True).astype(jnp.float32)
    out_ref[...] += hit

    # Apply reward / ignore_index validity once, on the last vocab step.
    @pl.when(vi == pl.num_programs(1) - 1)
    def _finalize():
        valid = tgt != jnp.int32(ignore_index)              # (TILE_B, 1)
        w = jnp.where(valid, reward_ref[...], jnp.float32(0.0))
        out_ref[...] = out_ref[...] * w


def _default_tiles(B, V, dtype, target_block_bytes=4 * 1024 * 1024):
    """Byte-sized blocks: ~4 MiB pred tile (128-aligned vocab, packed-sublane
    aligned batch); double-buffered footprint stays well under 32 MiB scoped
    VMEM on all of v5e/v6e/v7x.  When B allows it, >=2 batch blocks are made so
    the 'parallel' batch axis shards across v7x's two TensorCores."""
    itemsize = jnp.dtype(dtype).itemsize
    sublane = max(8, 32 // itemsize)          # 8 f32, 16 bf16, 32 int8/fp8

    if B <= sublane:
        tile_b = B
    else:
        half = (B + 1) // 2                   # guarantee >= 2 batch blocks
        tile_b = min(512, max(sublane, (half // sublane) * sublane))

    if V <= _LANE:
        tile_v = V
    else:
        cand = (target_block_bytes // (tile_b * itemsize)) // _LANE * _LANE
        tile_v = int(min(V, max(_LANE, cand)))
    return tile_b, tile_v


def pg_loss(pred, target, reward, ignore_index=-100, *, tile_b=None, tile_v=None):
    """pred: (B, V) float, target: (B,) int, reward: (B,) float -> scalar loss."""
    B, V = pred.shape
    db, dv = _default_tiles(B, V, pred.dtype)
    tile_b = db if tile_b is None else tile_b
    tile_v = dv if tile_v is None else tile_v

    target2d = target.astype(jnp.int32).reshape(B, 1)
    reward2d = reward.astype(jnp.float32).reshape(B, 1)

    grid = (pl.cdiv(B, tile_b), pl.cdiv(V, tile_v))
    kernel = functools.partial(_pg_loss_kernel, ignore_index=int(ignore_index))

    per_row = pl.pallas_call(
        kernel,
        out_shape=jax.ShapeDtypeStruct((B, 1), jnp.float32),
        grid_spec=pltpu.PrefetchScalarGridSpec(
            num_scalar_prefetch=0,
            grid=grid,
            in_specs=[
                pl.BlockSpec((tile_b, tile_v), lambda bi, vi: (bi, vi)),
                pl.BlockSpec((tile_b, 1), lambda bi, vi: (bi, 0)),
                pl.BlockSpec((tile_b, 1), lambda bi, vi: (bi, 0)),
            ],
            out_specs=pl.BlockSpec((tile_b, 1), lambda bi, vi: (bi, 0)),
        ),
        compiler_params=pltpu.CompilerParams(
            dimension_semantics=("parallel", "arbitrary"),
            vmem_limit_bytes=32 * 1024 * 1024,
        ),
    )(pred, target2d, reward2d)

    # Tiny epilogue reduction over B per-row values + negation.
    return -jnp.sum(per_row[:, 0])


def pg_loss_ref(pred, target, reward, ignore_index=-100):
    """Plain-JAX reference mirroring the PyTorch forward."""
    gathered = jnp.take_along_axis(
        pred.astype(jnp.float32), target.reshape(-1, 1), axis=1)[:, 0]
    valid = target != ignore_index
    return -jnp.sum(jnp.where(valid, gathered * reward.astype(jnp.float32), 0.0))


if __name__ == "__main__":
    def make_inputs(key, B, V, dtype):
        k1, k2, k3 = jax.random.split(key, 3)
        logits = jax.random.normal(k1, (B, V), dtype=jnp.float32)
        pred = jax.nn.log_softmax(logits, axis=-1).astype(dtype)
        target = jax.random.randint(k2, (B,), 0, V, dtype=jnp.int32)
        reward = jax.random.uniform(k3, (B,), dtype=jnp.float32)
        return pred, target, reward

    # 1) f32, small explicit tiles -> exercises the (batch, vocab) grid, the
    #    vocab-axis accumulation and the last-step finalize.
    pred, target, reward = make_inputs(jax.random.PRNGKey(0), 24, 384, jnp.float32)
    loss = pg_loss(pred, target, reward, tile_b=8, tile_v=128)
    jax.block_until_ready(loss)
    ref = pg_loss_ref(pred, target, reward)
    assert jnp.allclose(loss, ref, rtol=1e-5, atol=1e-5), (loss, ref)

    # 2) partial edge blocks in both grid dimensions.
    pred, target, reward = make_inputs(jax.random.PRNGKey(1), 20, 320, jnp.float32)
    loss = pg_loss(pred, target, reward, tile_b=8, tile_v=128)
    jax.block_until_ready(loss)
    ref = pg_loss_ref(pred, target, reward)
    assert jnp.allclose(loss, ref, rtol=1e-5, atol=1e-5), (loss, ref)

    # 3) bf16 pred streamed without upcast, byte-sized default tiles
    #    (packed-sublane batch tile = 16 for bf16).
    pred, target, reward = make_inputs(jax.random.PRNGKey(2), 16, 512, jnp.bfloat16)
    loss = pg_loss(pred, target, reward)
    jax.block_until_ready(loss)
    ref = pg_loss_ref(pred, target, reward)
    assert jnp.allclose(loss, ref, rtol=1e-5, atol=1e-5), (loss, ref)

    # 4) ignore_index path (rows with target == ignore_index contribute nothing).
    pred, target, reward = make_inputs(jax.random.PRNGKey(3), 16, 128, jnp.float32)
    target = target.at[0].set(5).at[3].set(5)
    loss = pg_loss(pred, target, reward, ignore_index=5, tile_b=8, tile_v=128)
    jax.block_until_ready(loss)
    ref = pg_loss_ref(pred, target, reward, ignore_index=5)
    assert jnp.allclose(loss, ref, rtol=1e-5, atol=1e-5), (loss, ref)

    # 5) default tiles on an f32 shape large enough to get >=2 batch blocks.
    pred, target, reward = make_inputs(jax.random.PRNGKey(4), 64, 2048, jnp.float32)
    loss = pg_loss(pred, target, reward)
    jax.block_until_ready(loss)
    ref = pg_loss_ref(pred, target, reward)
    assert jnp.allclose(loss, ref, rtol=1e-5, atol=1e-5), (loss, ref)

    print("KERNEL_OK")
</pallas_src>

<mosaic_0001>
module attributes {stable_mosaic.version = 11 : i64} {
  func.func @_pg_loss_kernel(%arg0: i32, %arg1: i32, %arg2: memref<8x128xf32, #tpu.memory_space<vmem>>, %arg3: memref<8x1xi32, #tpu.memory_space<vmem>>, %arg4: memref<8x1xf32, #tpu.memory_space<vmem>>, %arg5: memref<8x1xf32, #tpu.memory_space<vmem>>) attributes {dimension_semantics = [#tpu.dimension_semantics<parallel>, #tpu.dimension_semantics<arbitrary>], iteration_bounds = array<i64: 3, 3>, scalar_prefetch = 0 : i64, scratch_operands = 0 : i64, tpu.core_type = #tpu.core_type<tc>, window_params = [{transform_indices = @transform_0, window_bounds = array<i64: 8, 128>}, {transform_indices = @transform_1, window_bounds = array<i64: 8, 1>}, {transform_indices = @transform_2, window_bounds = array<i64: 8, 1>}, {transform_indices = @transform_3, window_bounds = array<i64: 8, 1>}]} {
    %c0_i32 = arith.constant 0 : i32
    %0 = arith.cmpi eq, %arg1, %c0_i32 : i32
    %1 = arith.extui %0 : i1 to i32
    %c0_i32_0 = arith.constant 0 : i32
    %2 = arith.cmpi ne, %1, %c0_i32_0 : i32
    scf.if %2 {
      %cst_10 = arith.constant 0.000000e+00 : f32
      %21 = vector.broadcast %cst_10 : f32 to vector<8x1xf32>
      %c0_11 = arith.constant 0 : index
      %c0_12 = arith.constant 0 : index
      %22 = vector.load %arg5[%c0_11, %c0_12] : memref<8x1xf32, #tpu.memory_space<vmem>>, vector<8x1xf32>
      tpu.vector_store %arg5[%c0_11, %c0_12], %21 {strides = array<i32>} : memref<8x1xf32, #tpu.memory_space<vmem>>, vector<8x1xf32>,
    } else {
    }
    %c0 = arith.constant 0 : index
    %c0_1 = arith.constant 0 : index
    %3 = vector.load %arg2[%c0, %c0_1] : memref<8x128xf32, #tpu.memory_space<vmem>>, vector<8x128xf32>
    %c0_2 = arith.constant 0 : index
    %c0_3 = arith.constant 0 : index
    %4 = vector.load %arg3[%c0_2, %c0_3] : memref<8x1xi32, #tpu.memory_space<vmem>>, vector<8x1xi32>
    %c128_i32 = arith.constant 128 : i32
    %5 = arith.muli %arg1, %c128_i32 : i32
    %6 = vector.broadcast %5 : i32 to vector<8x1xi32>
    %7 = arith.subi %4, %6 : vector<8x1xi32>
    %8 = tpu.iota {dimensions = array<i32: 1>} : vector<8x128xi32>
    %9 = vector.broadcast %7 : vector<8x1xi32> to vector<8x128xi32>
    %10 = arith.cmpi eq, %8, %9 : vector<8x128xi32>
    %cst = arith.constant 0.000000e+00 : f32
    %11 = vector.broadcast %cst : f32 to vector<8x128xf32>
    %12 = arith.select %10, %3, %11 : vector<8x128xi1>, vector<8x128xf32>
    %cst_4 = arith.constant dense<0.000000e+00> : vector<8xf32>
    %13 = vector.multi_reduction <add>, %12, %cst_4 [1] : vector<8x128xf32> to vector<8xf32>
    %14 = vector.shape_cast %13 : vector<8xf32> to vector<8x1xf32>
    %c0_5 = arith.constant 0 : index
    %c0_6 = arith.constant 0 : index
    %15 = vector.load %arg5[%c0_5, %c0_6] : memref<8x1xf32, #tpu.memory_space<vmem>>, vector<8x1xf32>
    %16 = arith.addf %15, %14 : vector<8x1xf32>
    %c0_7 = arith.constant 0 : index
    %c0_8 = arith.constant 0 : index
    %17 = vector.load %arg5[%c0_7, %c0_8] : memref<8x1xf32, #tpu.memory_space<vmem>>, vector<8x1xf32>
    tpu.vector_store %arg5[%c0_7, %c0_8], %16 {strides = array<i32>} : memref<8x1xf32, #tpu.memory_space<vmem>>, vector<8x1xf32>,
    %c2_i32 = arith.constant 2 : i32
    %18 = arith.cmpi eq, %arg1, %c2_i32 : i32
    %19 = arith.extui %18 : i1 to i32
    %c0_i32_9 = arith.constant 0 : i32
    %20 = arith.cmpi ne, %19, %c0_i32_9 : i32
    scf.if %20 {
      %c-100_i32 = arith.constant -100 : i32
      %21 = vector.broadcast %c-100_i32 : i32 to vector<8x1xi32>
      %22 = arith.cmpi ne, %4, %21 : vector<8x1xi32>
      %c0_10 = arith.constant 0 : index
      %c0_11 = arith.constant 0 : index
      %23 = vector.load %arg4[%c0_10, %c0_11] : memref<8x1xf32, #tpu.memory_space<vmem>>, vector<8x1xf32>
      %cst_12 = arith.constant 0.000000e+00 : f32
      %24 = vector.broadcast %cst_12 : f32 to vector<8x1xf32>
      %25 = arith.select %22, %23, %24 : vector<8x1xi1>, vector<8x1xf32>
      %c0_13 = arith.constant 0 : index
      %c0_14 = arith.constant 0 : index
      %26 = vector.load %arg5[%c0_13, %c0_14] : memref<8x1xf32, #tpu.memory_space<vmem>>, vector<8x1xf32>
      %27 = arith.mulf %26, %25 : vector<8x1xf32>
      %c0_15 = arith.constant 0 : index
      %c0_16 = arith.constant 0 : index
      %28 = vector.load %arg5[%c0_15, %c0_16] : memref<8x1xf32, #tpu.memory_space<vmem>>, vector<8x1xf32>
      tpu.vector_store %arg5[%c0_15, %c0_16], %27 {strides = array<i32>} : memref<8x1xf32, #tpu.memory_space<vmem>>, vector<8x1xf32>,
    } else {
    }
    return
  }
  func.func @transform_0(%arg0: i32, %arg1: i32) -> (i32, i32) {
    %c0_i32 = arith.constant 0 : i32
    return %arg0, %arg1 : i32, i32
  }
  func.func @transform_1(%arg0: i32, %arg1: i32) -> (i32, i32) {
    %c0_i32 = arith.constant 0 : i32
    %c0_i32_0 = arith.constant 0 : i32
    return %arg0, %c0_i32 : i32, i32
  }
  func.func @transform_2(%arg0: i32, %arg1: i32) -> (i32, i32) {
    %c0_i32 = arith.constant 0 : i32
    %c0_i32_0 = arith.constant 0 : i32
    return %arg0, %c0_i32 : i32, i32
  }
  func.func @transform_3(%arg0: i32, %arg1: i32) -> (i32, i32) {
    %c0_i32 = arith.constant 0 : i32
    %c0_i32_0 = arith.constant 0 : i32
    return %arg0, %c0_i32 : i32, i32
  }
}

</mosaic_0001>

<bundles_post_ra>
// kernel: tpu_custom_call.1
= control target key start
LH: loop header
LB: loop body
LE: loop exit
PB: predicated region body
PF: predicated region fallthrough
CT: control target
= control target key end

     0   :  { %8 = vsyncpa [#allocation3], 0  ;;  %s728_s0 = inlined_call_operand.hbm [shape: f32[24,384], index: 0, kind: input, shape index: {}]   ;;  %s729_s1 = inlined_call_operand.vmem [shape: s32[24,1], index: 1, kind: input, shape index: {}]   ;;  %s730_s2 = inlined_call_operand.vmem [shape: f32[24,1], index: 2, kind: input, shape index: {}]   ;;  %s731_s3 = inlined_call_operand.vmem [shape: f32[24,1], index: 3, kind: output, shape index: {}]  }
   0x1   :  { %10 = vsyncpa [#allocation3 + $0x1], 0  ;;  %s582_s12 = smov 0   ;;  %s584_s13 = smov 0  }
   0x2   :  { %s586_s14 = smov 0   ;;  %s588_s15 = smov 0  }
   0x3   :  { %s590_s16 = smov 0   ;;  %s592_s17 = smov 0  }
   0x4   :  { %s594_s18 = smov 0   ;;  %s596_s19 = smov 0  }
   0x5 LB: > { %s372_s20 = sadd.s32 4294967295, %s557_s19   ;;  %s25_s21 = sadd.s32 1, %s549_s17  ;;  %s557_s19 = sphi %s596_s19, %s16_s19   ;;  %s553_s18 = sphi %s594_s18, %s741_s18   ;;  %s549_s17 = sphi %s592_s17, %s740_s17   ;;  %s545_s16 = sphi %s590_s16, %s739_s16   ;;  %s541_s15 = sphi %s588_s15, %s738_s15   ;;  %s537_s14 = sphi %s586_s14, %s737_s14   ;;  %s533_s13 = sphi %s584_s13, %s736_s13   ;;  %s529_s12 = sphi %s582_s12, %s735_s12  }
   0x6   : > { %p26_p0 = scmp.ge.s32.totalorder %s25_s21, 3  ;;  %s28_s22 = sadd.s32 1, %s553_s18 }
   0x7   : > { %s37_s23 = sadd.s32 1, %s537_s14  ;;  %p44_p1 = scmp.ne.s32.totalorder %s537_s14, %s533_s13 }
   0x8   : > { %s743_s21 = smov (%p26_p0, %s25_s21), 0  ;;  %s745_s22 = smov (!%p26_p0, %s28_s22), %s553_s18 }
   0x9   : > { %s33_s24 = ssub.s32 %s549_s17, %s743_s21  ;;  %p45_p2 = scmp.eq.s32.totalorder %s557_s19, 0 }
   0xa   : > { %p30_p3 = scmp.ge.s32.totalorder %s745_s22, 3  ;;  %p50_p4 = scmp.ne.s32.totalorder %s533_s13, %s529_s12 }
   0xb   : > { %p633_p5 = por %p45_p2, %p44_p1  ;;  %p51_p6 = scmp.eq.s32.totalorder %s372_s20, 0 }
   0xc   : > { %s747_s22 = smov (%p30_p3, %s745_s22), 0  ;;  %p395_p8 = scmp.lt.s32.totalorder %s557_s19, 9 }
   0xd   : > { %p639_p7 = por %p51_p6, %p50_p4  ;;  %s32_s27 = ssub.s32 %s553_s18, %s747_s22 }
   0xe   : > { %s34_s28 = sor.u32 %s33_s24, %s32_s27  ;;  %s152_s29 = sand.u32 1, %s537_s14  }
   0xf   : > { %p35_p9 = scmp.eq.s32.totalorder %s34_s28, 0  ;;  %s376_s30 = sshll.u32 %s152_s29, 3 }
  0x10   : > { %s388_s4 = smul.u32 3, %s553_s18  ;;  %s156_s8 = scalar_lea.vmem [#allocation2], %s376_s30 }
  0x11   : > { %s649_s5 = scalar_select %p35_p9, %s537_s14, %s37_s23  }
  0x12   : > { %s161_s6 = sadd.s32 %s549_s17, %s388_s4  ;;  %s165_s9 = sshll.u32 %s156_s8, 4  ;;  %s166_s9 = int_to_ptr.vmem [resolvable:$true] %s165_s9 }
  0x13   : > { %s377_s7 = sshll.u32 %s161_s6, 7  ;;  %p659_p10 = pnand %p395_p8, %p633_p5 }
  0x14   : > { %s163_s12 = scalar_lea.hbm %s728_s0, %s377_s7  ;;  %p378_p11 = scmp.ge.s32.totalorder %s557_s19, 1 }
  0x15   : > { %p184_p12 = scmp.lt.s32.totalorder %s557_s19, 10  ;;  %s153_s23 = scalar_lea.sflag [#allocation3], %s152_s29 }
  0x16   : > { %p465_p13 = pneg %p659_p10  ;;  %s476_s24 = scalar_lea.vmem %s166_s9, 128 }
  0x17   : > { %p477_p0 = scmp.ne.s32.totalorder %s166_s9, %s476_s24  ;;  %s559_s27 = smov [#allocation2]  }
  0x18   : > { %s481_s28 = sshll.u32 %s559_s27, 4  ;;  %s482_s28 = int_to_ptr.vmem [resolvable:$false] %s481_s28 }
  0x19   : > { %p479_p1 = pnand %p477_p0, %p465_p13  ;;  %s483_s30 = scalar_lea.vmem %s482_s28, 256 }
  0x1a   : > { %p484_p3 = scmp.lt.s32.totalorder %s166_s9, %s482_s28  ;;  %p485_p4 = scmp.lt.s32.totalorder %s483_s30, %s476_s24 }
  0x1b   : > { %p480_p2 = pneg %p479_p1 }
  0x1c   : > { %p486_p5 = por %p485_p4, %p484_p3 }
  0x1e   : > { %p487_p6 = pnand %p486_p5, %p480_p2 }
  0x20   : > { %490 = shalt.err (!%p487_p6)
}
  0x21   : > { %394 = dma.hbm_to_vmem [thread:$0]  (!%p659_p10), %s163_s12, 128, %s166_s9, %s153_s23  }
  0x22   : > { %p185_p8 = pnand %p378_p11, %p184_p12 }
  0x23   : > { %s190_s25 = sand.u32 (!%p185_p8), 1, %s533_s13  }
  0x24   : > { %188 = sbr.rel (%p185_p8) target bundleno = 332 (0x14c), region = 32  ;;  %s379_s29 = sshll.u32 (!%p185_p8), %s190_s25, 3 }
  0x25   : > { %s191_s4 = scalar_lea.sflag (!%p185_p8), [#allocation3], %s190_s25  ;;  %s194_s6 = scalar_lea.vmem (!%p185_p8), [#allocation2], %s379_s29 }
  0x29   : > { %524 = dma.done.wait (%p639_p7), %s191_s4, 128  }
  0x2a   : > { %526 = vsyncadd (%p639_p7), %s191_s4, 4294967168  ;;  %p224_p9 = scmp.lt.s32.totalorder %s545_s16, 2  ;;  %p383_p7 = scmp.ne.s32.totalorder %s541_s15, 0 }
  0x2c   : > { %s749_s16 = smov (!%p224_p9, %s545_s16), 2  ;;  %239 = sbr.rel (%p383_p7) target bundleno = 51 (0x33), region = 40 }
  0x2d   : > { %s680_s7 = sshll.u32 %s749_s16, 3 }
  0x2e   : > { %s227_s10 = scalar_lea.vmem %s729_s1, %s680_s7  ;;  %s231_s20 = scalar_lea.vmem %s730_s2, %s680_s7 }
  0x2f   : > { %s694_s24 = scalar_lea.vmem %s731_s3, %s680_s7 }
  0x31   : > { %vm240_vm0 = vcmask 7168   ;;  %v560_v0 = vmov 0.0  }
  0x32   : > { %241 = vst.msk [vmem:[%s694_s24] sm:$0xff] %vm240_vm0, %v560_v0 }
  0x33 PF: > { %v243_v1 = vld [vmem:[%s227_s10] sm:$0xff]  ;;  %s384_s16 = sshll.u32 %s541_s15, 7  ;;  %v561_v2 = vmov 0   ;;  %v247_v5 = vlaneseq  ;;  %vm258_vm2 = vcmask 7168   ;;  %p385_p10 = scmp.ne.s32.totalorder %s541_s15, 2 }
  0x34   : > { %462 = vset.pattern.permute.xlu0 %v561_v2  ;;  %v245_v3 = vstv %s384_s16  ;;  %v242_v7 = vld [vmem:[%s194_s6] sm:$0xff] }
  0x35   : > { %v246_v4 = vsub.s32 %v243_v1, %v245_v3  ;;  %v248_v6 = vand.u32 127, %v247_v5 }
  0x37   : > { %250 = vperm.xlu0 %462, %v246_v4  }
  0x39   : > { %v256_v10 = vld [vmem:[%s694_s24] sm:$0xff] }
  0xb2   : > { %v251_v8 = vpop.permute.xlu0 %250 }
  0xb3   : > { %vm252_vm1 = vcmp.eq.s32.totalorder %v248_v6, %v251_v8 }
  0xb4   : > { %v253_v9 = vsel %vm252_vm1, %v242_v7, 0.0 }
  0xb5   : > { %254 = vadd.xlane.f32.xlu0 %v253_v9 }
 0x13d   : > { %263 = sbr.rel (%p385_p10) target bundleno = 332 (0x14c), region = 44 }
 0x13e   : > { %v255_v11 = vpop.xlane.xlu0 %254 }
 0x13f   : > { %v257_v12 = vadd.f32 %v256_v10, %v255_v11 }
 0x141   : > { %259 = vst.msk [vmem:[%s694_s24] sm:$0xff] %vm258_vm2, %v257_v12 }
 0x142   : > { %vm264_vm3 = vcmp.ne.s32.totalorder %v243_v1, 4294967196  ;;  %v265_v13 = vld [vmem:[%s231_s20] sm:$0xff] }
 0x143   : > { %v266_v15 = vsel %vm264_vm3, %v265_v13, 0.0 }
 0x148   : > { %v267_v14 = vld [vmem:[%s694_s24] sm:$0xff] }
 0x149   : > { %v268_v16 = vmul.f32 %v267_v14, %v266_v15 }
 0x14b   : > { %269 = vst.msk [vmem:[%s694_s24] sm:$0xff] %vm258_vm2, %v268_v16 }
 0x14c PF: > { %s16_s19 = sadd.s32 1, %s557_s19   ;;  %s735_s12 = smov %s533_s13 }
 0x14d   : > { %p13_p11 = scmp.ge.s32.totalorder %s16_s19, 11   ;;  %s736_s13 = smov %s537_s14 }
 0x14e   : > { %s737_s14 = smov %s649_s5  ;;  %s738_s15 = smov %s549_s17 }
 0x14f   : > { %s739_s16 = smov %s553_s18  ;;  %s740_s17 = smov %s743_s21 }
 0x150   : > { %s741_s18 = smov %s747_s22  ;;  %15 = sbr.rel (!%p13_p11) target bundleno = 5 (0x5), region = 86 }
 0x155   :  { %289 = vsyncpa [#allocation3], 1 }
 0x156   :  { %291 = vsyncpa [#allocation3 + $0x1], 1 }

</bundles_post_ra>
